<compile_context>
chip_gen: v7x
topology: tpu7x:2x2x1
jax: 0.10.0
libtpu: 0.0.40
codegen_flags: <defaults>
</compile_context>

<pallas_src>
import functools
import math

import jax
import jax.numpy as jnp
from jax.experimental import pallas as pl
from jax.experimental.pallas import tpu as pltpu


def _siren_kernel(x_ref, w_ref, b_ref, o_ref, *, w0: float, mxu_dtype):
    x = x_ref[...]
    w = w_ref[...]
    if mxu_dtype is not None:
        # In-kernel cast: avoids a separate XLA cast op + extra HBM traffic in the
        # wrapper; the VPU cast overlaps with the DMA pipeline.
        x = x.astype(mxu_dtype)
        w = w.astype(mxu_dtype)
    acc = jnp.dot(x, w, preferred_element_type=jnp.float32)   # MXU, f32 accumulate
    acc = acc + b_ref[...]                                     # (1, tn) broadcast, f32
    if w0 != 1.0:                                              # folded away on default path
        acc = acc * w0
    o_ref[...] = jnp.sin(acc).astype(o_ref.dtype)


def _round_up(x: int, m: int) -> int:
    return ((x + m - 1) // m) * m


def siren_layer(x, weight, bias, *, w0: float = 1.0,
                tile_m: int = 1024, tile_n: int = 512,
                mxu_dtype=jnp.bfloat16,
                vmem_budget_bytes: int = 40 * 1024 * 1024) -> jax.Array:
    """Apply sin(w0 * (x @ weight + bias)).

    x:      [batch, input_dim]   float32
    weight: [input_dim, hidden]  float32  (transposed nn.Linear weight)
    bias:   [hidden]             float32
    """
    batch, input_dim = x.shape
    assert weight.shape[0] == input_dim
    hidden = weight.shape[1]
    assert bias.shape == (hidden,)
    out_dtype = x.dtype

    # ---- lane-dense output: pad hidden to a multiple of 128 lanes --------------
    hidden_pad = _round_up(hidden, 128)
    if hidden_pad != hidden:
        weight = jnp.pad(weight, ((0, 0), (0, hidden_pad - hidden)))
        bias = jnp.pad(bias, (0, hidden_pad - hidden))
    bias2d = bias.astype(jnp.float32).reshape(1, hidden_pad)

    in_itemsize = jnp.dtype(x.dtype).itemsize
    out_itemsize = jnp.dtype(out_dtype).itemsize

    # Skip the in-kernel cast when the MXU dtype already matches the input dtype.
    kern_mxu_dtype = None
    if mxu_dtype is not None and jnp.dtype(mxu_dtype) != jnp.dtype(x.dtype):
        kern_mxu_dtype = mxu_dtype

    # ---- tile selection ---------------------------------------------------------
    tn = min(tile_n, hidden_pad)               # both multiples of 128
    grid_n = pl.cdiv(hidden_pad, tn)

    if batch <= 256:
        tm = batch                             # block == full dim is always legal
    else:
        # At least 2 batch tiles (v7x has 2 TensorCores on the "parallel" axis);
        # keep tm a multiple of 256 to feed the 256-wide MXU on v6e/v7x.
        tm = min(tile_m, max(256, -(-batch // 512) * 256))

    def _vmem_bytes(tm_: int) -> int:
        n_wbuf = 1 if grid_n == 1 else 2       # weight/bias buffer count
        return (2 * tm_ * input_dim * in_itemsize          # x   (double-buffered, f32)
                + n_wbuf * input_dim * tn * in_itemsize    # weight (f32)
                + n_wbuf * tn * 4                          # bias (f32)
                + 2 * tm_ * tn * out_itemsize)             # out (double-buffered)

    while tm > 256 and _vmem_bytes(tm) > vmem_budget_bytes:
        tm //= 2                               # stays a multiple of 8

    grid_m = pl.cdiv(batch, tm)
    # Stay under v7x's 64 MiB physical VMEM; v5e/v6e have 128 MiB so this is safe.
    vmem_limit = int(min(max(int(_vmem_bytes(tm) * 1.5) + (2 << 20), 16 << 20),
                         60 << 20))

    try:
        cost = pl.CostEstimate(
            flops=2 * batch * input_dim * hidden_pad,
            transcendentals=batch * hidden_pad,
            bytes_accessed=(batch * input_dim * in_itemsize
                            + input_dim * hidden_pad * in_itemsize
                            + hidden_pad * 4
                            + batch * hidden_pad * out_itemsize))
    except Exception:
        cost = None

    kernel = functools.partial(_siren_kernel, w0=float(w0), mxu_dtype=kern_mxu_dtype)

    def _call(single_buffer_weights: bool):
        # Weight/bias index_maps are constant across the batch axis; when there is a
        # single hidden tile they are fully grid-invariant, so double-buffering them
        # only wastes VMEM -> request a single resident copy.
        const_kw = ({"pipeline_mode": pl.Buffered(1)}
                    if (single_buffer_weights and hasattr(pl, "Buffered")) else {})
        return pl.pallas_call(
            kernel,
            out_shape=jax.ShapeDtypeStruct((batch, hidden_pad), out_dtype),
            grid_spec=pltpu.PrefetchScalarGridSpec(
                num_scalar_prefetch=0,
                grid=(grid_m, grid_n),
                in_specs=[
                    pl.BlockSpec((tm, input_dim), lambda i, j: (i, 0)),
                    pl.BlockSpec((input_dim, tn), lambda i, j: (0, j), **const_kw),
                    pl.BlockSpec((1, tn), lambda i, j: (0, j), **const_kw),
                ],
                out_specs=pl.BlockSpec((tm, tn), lambda i, j: (i, j)),
            ),
            compiler_params=pltpu.CompilerParams(
                dimension_semantics=("parallel", "parallel"),
                vmem_limit_bytes=vmem_limit),
            cost_estimate=cost,
        )(x, weight, bias2d)

    try:
        out = _call(single_buffer_weights=(grid_n == 1))
    except Exception:  # fallback for jax versions without BlockSpec pipeline_mode
        out = _call(single_buffer_weights=False)

    if hidden_pad != hidden:
        out = out[:, :hidden]
    return out


def init_siren_params(key, input_dim: int, hidden_dim: int, *,
                      w0: float = 1.0, is_first: bool = False, c: float = 6.0,
                      fold_w0: bool = True):
    """SIREN init matching SirenLayer.reset_parameters.

    Returns (weight [input_dim, hidden], bias [hidden], kernel_w0).  When fold_w0 is
    True, w0 is folded into weight/bias (sin(x@(w0 W)+w0 b) == sin(w0 (x@W+b))) so
    the kernel can skip the per-element `w0 *` multiply; pass kernel_w0 to siren_layer.
    """
    w_std = (1.0 / input_dim) if is_first else (math.sqrt(c / input_dim) / w0)
    kw, kb = jax.random.split(key)
    weight = jax.random.uniform(kw, (input_dim, hidden_dim), jnp.float32,
                                minval=-w_std, maxval=w_std)
    bias = jax.random.uniform(kb, (hidden_dim,), jnp.float32,
                              minval=-w_std, maxval=w_std)
    if fold_w0:
        return weight * w0, bias * w0, 1.0
    return weight, bias, float(w0)


if __name__ == "__main__":
    key = jax.random.PRNGKey(0)
    k_x, k_p, k_x2, k_p2 = jax.random.split(key, 4)

    # ---------------- small demo matching the module defaults -------------------
    batch, input_dim, hidden_dim = 8, 4, 32
    w0 = 30.0

    x = jax.random.normal(k_x, (batch, input_dim), jnp.float32)
    w_raw, b_raw, _ = init_siren_params(k_p, input_dim, hidden_dim,
                                        w0=w0, is_first=True, fold_w0=False)
    # w0 folded into the parameters (exactly what init_siren_params(fold_w0=True) does).
    w_fold, b_fold = w_raw * w0, b_raw * w0

    # f32 MXU path: tight check against the (folded) linear+sine reference.
    out_f32 = jax.block_until_ready(
        siren_layer(x, w_fold, b_fold, w0=1.0, mxu_dtype=jnp.float32))
    ref_f32 = jnp.sin(x @ w_fold + b_fold)     # == sin(w0 * (x @ w_raw + b_raw))
    assert out_f32.shape == (batch, hidden_dim)
    assert jnp.allclose(out_f32, ref_f32, atol=1e-4, rtol=1e-4), \
        float(jnp.max(jnp.abs(out_f32 - ref_f32)))

    # Also check the un-folded path (kernel applies w0 itself).
    out_w0 = jax.block_until_ready(
        siren_layer(x, w_raw, b_raw, w0=w0, mxu_dtype=jnp.float32))
    assert jnp.allclose(out_w0, ref_f32, atol=1e-4, rtol=1e-4), \
        float(jnp.max(jnp.abs(out_w0 - ref_f32)))

    # Default bf16-MXU path: check against a bf16-operand / f32-accumulate reference.
    out_bf16 = jax.block_until_ready(siren_layer(x, w_fold, b_fold, w0=1.0))
    ref_bf16 = jnp.sin(
        jnp.dot(x.astype(jnp.bfloat16), w_fold.astype(jnp.bfloat16),
                preferred_element_type=jnp.float32) + b_fold)
    assert jnp.allclose(out_bf16, ref_bf16, atol=2e-3, rtol=2e-3), \
        float(jnp.max(jnp.abs(out_bf16 - ref_bf16)))

    # ---------------- multi-tile path (2 batch tiles x 2 hidden tiles) ----------
    batch2, in2, hid2 = 272, 64, 256           # partial last batch tile on purpose
    x2 = jax.random.normal(k_x2, (batch2, in2), jnp.float32)
    w2, b2, w0_2 = init_siren_params(k_p2, in2, hid2, w0=1.0, is_first=False)
    out2 = jax.block_until_ready(
        siren_layer(x2, w2, b2, w0=w0_2, tile_n=128))
    ref2 = jnp.sin(
        jnp.dot(x2.astype(jnp.bfloat16), w2.astype(jnp.bfloat16),
                preferred_element_type=jnp.float32) + b2)
    assert out2.shape == (batch2, hid2)
    assert jnp.allclose(out2, ref2, atol=2e-3, rtol=2e-3), \
        float(jnp.max(jnp.abs(out2 - ref2)))

    print("KERNEL_OK")
</pallas_src>

<mosaic_0001>
module attributes {stable_mosaic.version = 11 : i64} {
  func.func @_siren_kernel(%arg0: i32, %arg1: i32, %arg2: memref<8x4xf32, #tpu.memory_space<vmem>>, %arg3: memref<4x128xf32, #tpu.memory_space<vmem>>, %arg4: memref<1x128xf32, #tpu.memory_space<vmem>>, %arg5: memref<8x128xf32, #tpu.memory_space<vmem>>) attributes {dimension_semantics = [#tpu.dimension_semantics<parallel>, #tpu.dimension_semantics<parallel>], iteration_bounds = array<i64: 1, 1>, scalar_prefetch = 0 : i64, scratch_operands = 0 : i64, tpu.core_type = #tpu.core_type<tc>, window_params = [{transform_indices = @transform_0, window_bounds = array<i64: 8, 4>}, {pipeline_mode = #tpu.pipeline_mode<synchronous>, transform_indices = @transform_1, window_bounds = array<i64: 4, 128>}, {pipeline_mode = #tpu.pipeline_mode<synchronous>, transform_indices = @transform_2, window_bounds = array<i64: 1, 128>}, {transform_indices = @transform_3, window_bounds = array<i64: 8, 128>}]} {
    %c0 = arith.constant 0 : index
    %c0_0 = arith.constant 0 : index
    %0 = vector.load %arg2[%c0, %c0_0] : memref<8x4xf32, #tpu.memory_space<vmem>>, vector<8x4xf32>
    %c0_1 = arith.constant 0 : index
    %c0_2 = arith.constant 0 : index
    %1 = vector.load %arg3[%c0_1, %c0_2] : memref<4x128xf32, #tpu.memory_space<vmem>>, vector<4x128xf32>
    %cst = arith.constant dense<0.000000e+00> : vector<8x128xf32>
    %2 = tpu.matmul %0, %1, %cst {dimension_numbers = #tpu.dot_dimension_numbers<[1], [0], [0], [1], [0, 0, 1, 1], [], []>} : vector<8x4xf32>, vector<4x128xf32>, vector<8x128xf32> -> vector<8x128xf32>
    %c0_3 = arith.constant 0 : index
    %c0_4 = arith.constant 0 : index
    %3 = vector.load %arg4[%c0_3, %c0_4] : memref<1x128xf32, #tpu.memory_space<vmem>>, vector<1x128xf32>
    %4 = vector.broadcast %3 : vector<1x128xf32> to vector<8x128xf32>
    %5 = arith.addf %2, %4 : vector<8x128xf32>
    %6 = math.sin %5 : vector<8x128xf32>
    %c0_5 = arith.constant 0 : index
    %c0_6 = arith.constant 0 : index
    %7 = vector.load %arg5[%c0_5, %c0_6] : memref<8x128xf32, #tpu.memory_space<vmem>>, vector<8x128xf32>
    tpu.vector_store %arg5[%c0_5, %c0_6], %6 {strides = array<i32>} : memref<8x128xf32, #tpu.memory_space<vmem>>, vector<8x128xf32>,
    return
  }
  func.func @transform_0(%arg0: i32, %arg1: i32) -> (i32, i32) {
    %c0_i32 = arith.constant 0 : i32
    %c0_i32_0 = arith.constant 0 : i32
    return %arg0, %c0_i32 : i32, i32
  }
  func.func @transform_1(%arg0: i32, %arg1: i32) -> (i32, i32) {
    %c0_i32 = arith.constant 0 : i32
    %c0_i32_0 = arith.constant 0 : i32
    return %c0_i32, %arg1 : i32, i32
  }
  func.func @transform_2(%arg0: i32, %arg1: i32) -> (i32, i32) {
    %c0_i32 = arith.constant 0 : i32
    %c0_i32_0 = arith.constant 0 : i32
    return %c0_i32, %arg1 : i32, i32
  }
  func.func @transform_3(%arg0: i32, %arg1: i32) -> (i32, i32) {
    %c0_i32 = arith.constant 0 : i32
    return %arg0, %arg1 : i32, i32
  }
}

module attributes {stable_mosaic.version = 11 : i64} {
  func.func @_siren_kernel(%arg0: i32, %arg1: i32, %arg2: memref<8x4xf32, #tpu.memory_space<vmem>>, %arg3: memref<4x128xf32, #tpu.memory_space<vmem>>, %arg4: memref<1x128xf32, #tpu.memory_space<vmem>>, %arg5: memref<8x128xf32, #tpu.memory_space<vmem>>) attributes {dimension_semantics = [#tpu.dimension_semantics<parallel>, #tpu.dimension_semantics<parallel>], iteration_bounds = array<i64: 1, 1>, scalar_prefetch = 0 : i64, scratch_operands = 0 : i64, tpu.core_type = #tpu.core_type<tc>, window_params = [{transform_indices = @transform_0, window_bounds = array<i64: 8, 4>}, {transform_indices = @transform_1, window_bounds = array<i64: 4, 128>}, {transform_indices = @transform_2, window_bounds = array<i64: 1, 128>}, {transform_indices = @transform_3, window_bounds = array<i64: 8, 128>}]} {
    %c0 = arith.constant 0 : index
    %c0_0 = arith.constant 0 : index
    %0 = vector.load %arg2[%c0, %c0_0] : memref<8x4xf32, #tpu.memory_space<vmem>>, vector<8x4xf32>
    %c0_1 = arith.constant 0 : index
    %c0_2 = arith.constant 0 : index
    %1 = vector.load %arg3[%c0_1, %c0_2] : memref<4x128xf32, #tpu.memory_space<vmem>>, vector<4x128xf32>
    %cst = arith.constant dense<0.000000e+00> : vector<8x128xf32>
    %2 = tpu.matmul %0, %1, %cst {dimension_numbers = #tpu.dot_dimension_numbers<[1], [0], [0], [1], [0, 0, 1, 1], [], []>} : vector<8x4xf32>, vector<4x128xf32>, vector<8x128xf32> -> vector<8x128xf32>
    %c0_3 = arith.constant 0 : index
    %c0_4 = arith.constant 0 : index
    %3 = vector.load %arg4[%c0_3, %c0_4] : memref<1x128xf32, #tpu.memory_space<vmem>>, vector<1x128xf32>
    %4 = vector.broadcast %3 : vector<1x128xf32> to vector<8x128xf32>
    %5 = arith.addf %2, %4 : vector<8x128xf32>
    %6 = math.sin %5 : vector<8x128xf32>
    %c0_5 = arith.constant 0 : index
    %c0_6 = arith.constant 0 : index
    %7 = vector.load %arg5[%c0_5, %c0_6] : memref<8x128xf32, #tpu.memory_space<vmem>>, vector<8x128xf32>
    tpu.vector_store %arg5[%c0_5, %c0_6], %6 {strides = array<i32>} : memref<8x128xf32, #tpu.memory_space<vmem>>, vector<8x128xf32>,
    return
  }
  func.func @transform_0(%arg0: i32, %arg1: i32) -> (i32, i32) {
    %c0_i32 = arith.constant 0 : i32
    %c0_i32_0 = arith.constant 0 : i32
    return %arg0, %c0_i32 : i32, i32
  }
  func.func @transform_1(%arg0: i32, %arg1: i32) -> (i32, i32) {
    %c0_i32 = arith.constant 0 : i32
    %c0_i32_0 = arith.constant 0 : i32
    return %c0_i32, %arg1 : i32, i32
  }
  func.func @transform_2(%arg0: i32, %arg1: i32) -> (i32, i32) {
    %c0_i32 = arith.constant 0 : i32
    %c0_i32_0 = arith.constant 0 : i32
    return %c0_i32, %arg1 : i32, i32
  }
  func.func @transform_3(%arg0: i32, %arg1: i32) -> (i32, i32) {
    %c0_i32 = arith.constant 0 : i32
    return %arg0, %arg1 : i32, i32
  }
}

</mosaic_0001>

<bundles_post_ra>
// kernel: tpu_custom_call.1
= control target key start
LH: loop header
LB: loop body
LE: loop exit
PB: predicated region body
PF: predicated region fallthrough
CT: control target
= control target key end

     0   :  { %vm28_vm0 = vcmask 1043456   ;;  %v276_v2 = vmov 0.0   ;;  %vm277_vm1 = vmmov 0   ;;  %vm24_vm2 = vcmask 31744   ;;  %s347_s0 = inlined_call_operand.vmem [shape: f32[8,4], index: 0, kind: input, shape index: {}]   ;;  %s348_s1 = inlined_call_operand.vmem [shape: f32[4,128], index: 1, kind: input, shape index: {}]   ;;  %s349_s2 = inlined_call_operand.vmem [shape: f32[1,128], index: 2, kind: input, shape index: {}]   ;;  %s350_s3 = inlined_call_operand.hbm [shape: f32[8,128], index: 3, kind: output, shape index: {}]  }
   0x1   :  { %v16_v0 = vld [vmem:[%s348_s1] sm:$0xf]  ;;  %230 = vmatprep.subr.mxu0 %v276_v2  ;;  %232 = vmatprep.mubr.msk.f32.mxu0 %vm277_vm1, %v276_v2 }
   0x2   :  { %v15_v1 = vld [vmem:[%s347_s0] sm:$0xff] }
   0x3   :  { %8 = vsyncpa [#allocation3], 0  ;;  %231 = vmatpush3.msk.msra.mxu0 %vm28_vm0, %v16_v0  ;;  %v221_v3 = vld [vmem:[%s349_s2] ss:$0 sm:$0xff]  ;;  %v278_v17 = vmov 683565275  }
   0x4   :  { %233 = vmatmul.mubr.msk.f32.vlgmr.msra.gmra.mrb[0].mxu0 %vm24_vm2, %v15_v1  ;;  %v279_v19 = vmov 2475754826   ;;  %v280_v22 = vmov 2131351028   ;;  %v281_v25 = vmov 2102212464  }
   0x5   :  { %v282_v28 = vmov 920167782   ;;  %v283_v31 = vmov 1326507024   ;;  %s284_s0 = smov [#allocation2]  }
   0x6   :  { %s213_s1 = sshll.u32 %s284_s0, 4  ;;  %s214_s1 = int_to_ptr.vmem [resolvable:$true] %s213_s1 }
   0x7   :  { %s252_s2 = scalar_lea.vmem %s214_s1, 128  ;;  %p257_p1 = scmp.lt.s32.totalorder %s214_s1, %s214_s1 }
   0x8   :  { %p253_p0 = scmp.ne.s32.totalorder %s214_s1, %s252_s2  ;;  %p258_p2 = scmp.lt.s32.totalorder %s252_s2, %s252_s2 }
   0xa   :  { %p259_p3 = por %p258_p2, %p257_p1 }
   0xc   :  { %p260_p4 = pnand %p259_p3, %p253_p0 }
  0xd7   :  { %v98_v4 = vpop.f32.mrb[0].mxu0 }
  0xd8   :  { %v314_v5 = vadd.f32 %v221_v3, %v98_v4  ;;  %v234_v6 = vpop.f32.mrb[1].mxu0 }
  0xda   :  { %v105_v7 = vand.u32 2139095040, %v314_v5  ;;  %v102_v11 = vand.u32 2147483647, %v314_v5  ;;  %vm104_vm10 = vcmp.lt.s32.totalorder %v314_v5, 0  ;;  %vm194_vm15 = vweird.f32 %v314_v5 }
  0xdc   :  { %v106_v8 = vshrl.u32 %v105_v7, 23  ;;  %v109_v14 = vand.u32 8388607, %v102_v11  ;;  %vm103_vm11 = vcmp.le.f32.partialorder %v102_v11, 0.7853982 }
  0xde   :  { %v224_v9 = vadd.s32 4294967169, %v106_v8  ;;  %v110_v33 = vor.u32 8388608, %v109_v14 }
  0xe0   :  { %v112_v10 = vadd.s32 1, %v224_v9  ;;  %v150_v47 = vshll.u32 %v110_v33, 8 }
  0xe2   :  { %vm113_vm3 = vcmp.gt.s32.totalorder %v112_v10, 0 }
  0xe3   :  { %v114_v12 = vsel %vm113_vm3, %v112_v10, 0 }
  0xe4   :  { %v116_v13 = vand.u32 31, %v114_v12  ;;  %v115_v16 = vshrl.u32 %v114_v12, 5 }
  0xe6   :  { %v117_v15 = vsub.s32 32, %v116_v13  ;;  %v119_v18 = vshll.u32 %v278_v17, %v116_v13  ;;  %v122_v20 = vshll.u32 %v279_v19, %v116_v13  ;;  %v125_v24 = vshll.u32 %v280_v22, %v116_v13 }
  0xe7   :  { %v128_v27 = vshll.u32 %v281_v25, %v116_v13  ;;  %v131_v30 = vshll.u32 %v282_v28, %v116_v13  ;;  %vm134_vm4 = vcmp.lt.s32.totalorder %v115_v16, 1  ;;  %vm137_vm5 = vcmp.lt.s32.totalorder %v115_v16, 4 }
  0xe8   :  { %v120_v21 = vshrl.u32 %v279_v19, %v117_v15  ;;  %v123_v23 = vshrl.u32 %v280_v22, %v117_v15  ;;  %v126_v26 = vshrl.u32 %v281_v25, %v117_v15  ;;  %v129_v29 = vshrl.u32 %v282_v28, %v117_v15 }
  0xe9   :  { %v132_v32 = vshrl.u32 %v283_v31, %v117_v15  ;;  %v118_v42 = vshrl.u32 %v278_v17, %v117_v15  ;;  %vm136_vm6 = vcmp.lt.s32.totalorder %v115_v16, 3  ;;  %vm135_vm7 = vcmp.lt.s32.totalorder %v115_v16, 2 }
  0xea   :  { %v121_v34 = vor.u32 %v120_v21, %v119_v18  ;;  %v124_v35 = vor.u32 %v123_v23, %v122_v20  ;;  %v127_v36 = vor.u32 %v126_v26, %v125_v24  ;;  %v130_v37 = vor.u32 %v129_v29, %v128_v27 }
  0xeb   :  { %v133_v38 = vor.u32 %v132_v32, %v131_v30 }
  0xec   :  { %v139_v39 = vsel %vm137_vm5, %v127_v36, 2102212464  ;;  %v142_v40 = vsel %vm134_vm4, %v121_v34, %v124_v35  ;;  %v146_v41 = vsel %vm134_vm4, %v124_v35, %v127_v36  ;;  %v143_v43 = vsel %vm137_vm5, %v130_v37, 920167782 }
  0xed   :  { %v147_v44 = vsel %vm137_vm5, %v133_v38, 1326507024  ;;  %v144_v45 = vsel %vm136_vm6, %v127_v36, %v143_v43  ;;  %v138_v48 = vsel %vm134_vm4, %v118_v42, %v121_v34  ;;  %v140_v49 = vsel %vm136_vm6, %v124_v35, %v139_v39 }
  0xee   :  { %v148_v46 = vsel %vm136_vm6, %v130_v37, %v147_v44  ;;  %v145_v50 = vsel %vm135_vm7, %v142_v40, %v144_v45  ;;  %v141_v56 = vsel %vm135_vm7, %v138_v48, %v140_v49 }
  0xef   :  { %v149_v51 = vsel %vm135_vm7, %v146_v41, %v148_v46  ;;  %v323_v54 = vmul.u32.u64.low %v150_v47, %v145_v50  ;;  %v324_v55 = vmul.u32.u64.high %v150_v47, %v145_v50, %v323_v54  ;;  %v157_v58 = vmul.u32 %v150_v47, %v141_v56 }
  0xf0   :  { %v320_v52 = vmul.u32.u64.low %v150_v47, %v149_v51  ;;  %v321_v53 = vmul.u32.u64.high %v150_v47, %v149_v51, %v320_v52 }
  0xf1   :  { %v160_v57 = vadd.s32 1, %v324_v55 }
  0xf2   :  { %vm159_vm8 = vc.u32 %v321_v53, %v323_v54  ;;  %v158_v7 = vadd.s32 %v323_v54, %v321_v53 }
  0xf3   :  { %v161_v59 = vsel %vm159_vm8, %v160_v57, %v324_v55 }
  0xf4   :  { %v162_v60 = vadd.s32 %v161_v59, %v157_v58 }
  0xf6   :  { %v163_v61 = vadd.s32 536870912, %v162_v60 }
  0xf8   :  { %v164_v62 = vshrl.u32 %v163_v61, 30 }
  0xfa   :  { %v165_v63 = vshll.u32 %v164_v62, 30  ;;  %v188_v20 = vsub.s32 4, %v164_v62 }
  0xfc   :  { %v166_v0 = vsub.s32 %v162_v60, %v165_v63  ;;  %v189_v23 = vsel %vm104_vm10, %v188_v20, %v164_v62 }
  0xfd   :  { %v191_v25 = vsel %vm103_vm11, 0, %v189_v23 }
  0xfe   :  { %v168_v1 = vsub.s32 0, %v166_v0  ;;  %v195_v26 = vadd.s32 3, %v191_v25 }
 0x100   :  { %v225_v2 = vmin.u32 %v168_v1, %v166_v0  ;;  %v196_v27 = vand.u32 3, %v195_v26 }
 0x102   :  { %v170_v3 = vclz %v225_v2  ;;  %vm201_vm12 = vcmp.eq.s32.totalorder %v196_v27, 2  ;;  %vm198_vm13 = vcmp.eq.s32.totalorder %v196_v27, 0  ;;  %vm197_vm14 = vcmp.lt.s32.totalorder %v196_v27, 2 }
 0x104   :  { %v226_v4 = vadd.s32 4294967294, %v170_v3 }
 0x106   :  { %vm227_vm9 = vcmp.lt.s32.totalorder %v226_v4, 0 }
 0x107   :  { %v173_v6 = vsel %vm227_vm9, 0, %v226_v4 }
 0x108   :  { %v174_v8 = vsub.s32 32, %v173_v6  ;;  %v178_v9 = vsub.s32 4294967266, %v173_v6  ;;  %v175_v10 = vshll.u32 %v166_v0, %v173_v6 }
 0x10a   :  { %v176_v12 = vshrl.u32 %v158_v7, %v174_v8  ;;  %v179_v13 = vadd.s32 127, %v178_v9 }
 0x10c   :  { %v177_v14 = vor.u32 %v176_v12, %v175_v10  ;;  %v180_v15 = vshll.u32 %v179_v13, 23 }
 0x10e   :  { %v181_v16 = vor.u32 4788187, %v180_v15  ;;  %v184_v18 = vcvt.s32.f32 %v177_v14 }
 0x110   :  { %v182_v17 = vand.u32 2147483647, %v181_v16 }
 0x112   :  { %v185_v19 = vmul.f32 %v184_v18, %v182_v17 }
 0x114   :  { %v186_v21 = vxor.u32 2147483648, %v185_v19 }
 0x116   :  { %v187_v22 = vsel %vm104_vm10, %v186_v21, %v185_v19 }
 0x117   :  { %v190_v24 = vsel %vm103_vm11, %v314_v5, %v187_v22 }
 0x118   :  { %248 = vcosq.f32 %v190_v24 }
 0x119   :  { %250 = vsinq.f32 %v190_v24 }
 0x122   :  { %v249_v28 = vpop.eup %248 }
 0x123   :  { %v251_v29 = vpop.eup %250  ;;  %v202_v30 = vxor.u32 2147483648, %v249_v28 }
 0x124   :  { %v199_v31 = vxor.u32 2147483648, %v251_v29 }
 0x125   :  { %v203_v32 = vsel %vm201_vm12, %v202_v30, %v251_v29 }
 0x126   :  { %v200_v33 = vsel %vm198_vm13, %v249_v28, %v199_v31 }
 0x127   :  { %v204_v11 = vsel %vm197_vm14, %v200_v33, %v203_v32 }
 0x128   :  { %v205_v34 = vsel %vm194_vm15, nan, %v204_v11 }
 0x129   :  { %206 = vst [vmem:[#allocation2] sm:$0xff] %v205_v34 }
 0x12a   :  { %263 = shalt.err (!%p260_p4)
}
 0x12b   :  { %s264_s20 = scalar_lea.hbm %s350_s3, 128 }
 0x12c   :  { %p265_p5 = scmp.ne.s32.totalorder %s350_s3, %s264_s20  ;;  %p268_p6 = scmp.lt.u32.totalorder %s264_s20, %s350_s3 }
 0x12e   :  { %p270_p7 = pnand %p268_p6, %p265_p5 }
 0x130   :  { %273 = shalt.err (!%p270_p7)
}
 0x131   :  { %216 = dma.vmem_to_hbm [thread:$0]  %s214_s1, 128, %s350_s3, [#allocation3]  }
 0x132   :  { %274 = dma.done.wait [#allocation3], 128  }
 0x133   :  { %275 = vsyncadd [#allocation3], 4294967168 }
 0x134   :  { %220 = vsyncpa [#allocation3], 1 }

// kernel: tpu_custom_call.1
= control target key start
LH: loop header
LB: loop body
LE: loop exit
PB: predicated region body
PF: predicated region fallthrough
CT: control target
= control target key end

     0   :  { %vm28_vm0 = vcmask 1043456   ;;  %v276_v2 = vmov 0.0   ;;  %vm277_vm1 = vmmov 0   ;;  %vm24_vm2 = vcmask 31744   ;;  %s347_s0 = inlined_call_operand.vmem [shape: f32[8,4], index: 0, kind: input, shape index: {}]   ;;  %s348_s1 = inlined_call_operand.vmem [shape: f32[4,128], index: 1, kind: input, shape index: {}]   ;;  %s349_s2 = inlined_call_operand.vmem [shape: f32[1,128], index: 2, kind: input, shape index: {}]   ;;  %s350_s3 = inlined_call_operand.hbm [shape: f32[8,128], index: 3, kind: output, shape index: {}]  }
   0x1   :  { %v16_v0 = vld [vmem:[%s348_s1] sm:$0xf]  ;;  %230 = vmatprep.subr.mxu0 %v276_v2  ;;  %232 = vmatprep.mubr.msk.f32.mxu0 %vm277_vm1, %v276_v2 }
   0x2   :  { %v15_v1 = vld [vmem:[%s347_s0] sm:$0xff] }
   0x3   :  { %8 = vsyncpa [#allocation3], 0  ;;  %231 = vmatpush3.msk.msra.mxu0 %vm28_vm0, %v16_v0  ;;  %v221_v3 = vld [vmem:[%s349_s2] ss:$0 sm:$0xff]  ;;  %v278_v17 = vmov 683565275  }
   0x4   :  { %233 = vmatmul.mubr.msk.f32.vlgmr.msra.gmra.mrb[0].mxu0 %vm24_vm2, %v15_v1  ;;  %v279_v19 = vmov 2475754826   ;;  %v280_v22 = vmov 2131351028   ;;  %v281_v25 = vmov 2102212464  }
   0x5   :  { %v282_v28 = vmov 920167782   ;;  %v283_v31 = vmov 1326507024   ;;  %s284_s0 = smov [#allocation2]  }
   0x6   :  { %s213_s1 = sshll.u32 %s284_s0, 4  ;;  %s214_s1 = int_to_ptr.vmem [resolvable:$true] %s213_s1 }
   0x7   :  { %s252_s2 = scalar_lea.vmem %s214_s1, 128  ;;  %p257_p1 = scmp.lt.s32.totalorder %s214_s1, %s214_s1 }
   0x8   :  { %p253_p0 = scmp.ne.s32.totalorder %s214_s1, %s252_s2  ;;  %p258_p2 = scmp.lt.s32.totalorder %s252_s2, %s252_s2 }
   0xa   :  { %p259_p3 = por %p258_p2, %p257_p1 }
   0xc   :  { %p260_p4 = pnand %p259_p3, %p253_p0 }
  0xd7   :  { %v98_v4 = vpop.f32.mrb[0].mxu0 }
  0xd8   :  { %v314_v5 = vadd.f32 %v221_v3, %v98_v4  ;;  %v234_v6 = vpop.f32.mrb[1].mxu0 }
  0xda   :  { %v105_v7 = vand.u32 2139095040, %v314_v5  ;;  %v102_v11 = vand.u32 2147483647, %v314_v5  ;;  %vm104_vm10 = vcmp.lt.s32.totalorder %v314_v5, 0  ;;  %vm194_vm15 = vweird.f32 %v314_v5 }
  0xdc   :  { %v106_v8 = vshrl.u32 %v105_v7, 23  ;;  %v109_v14 = vand.u32 8388607, %v102_v11  ;;  %vm103_vm11 = vcmp.le.f32.partialorder %v102_v11, 0.7853982 }
  0xde   :  { %v224_v9 = vadd.s32 4294967169, %v106_v8  ;;  %v110_v33 = vor.u32 8388608, %v109_v14 }
  0xe0   :  { %v112_v10 = vadd.s32 1, %v224_v9  ;;  %v150_v47 = vshll.u32 %v110_v33, 8 }
  0xe2   :  { %vm113_vm3 = vcmp.gt.s32.totalorder %v112_v10, 0 }
  0xe3   :  { %v114_v12 = vsel %vm113_vm3, %v112_v10, 0 }
  0xe4   :  { %v116_v13 = vand.u32 31, %v114_v12  ;;  %v115_v16 = vshrl.u32 %v114_v12, 5 }
  0xe6   :  { %v117_v15 = vsub.s32 32, %v116_v13  ;;  %v119_v18 = vshll.u32 %v278_v17, %v116_v13  ;;  %v122_v20 = vshll.u32 %v279_v19, %v116_v13  ;;  %v125_v24 = vshll.u32 %v280_v22, %v116_v13 }
  0xe7   :  { %v128_v27 = vshll.u32 %v281_v25, %v116_v13  ;;  %v131_v30 = vshll.u32 %v282_v28, %v116_v13  ;;  %vm134_vm4 = vcmp.lt.s32.totalorder %v115_v16, 1  ;;  %vm137_vm5 = vcmp.lt.s32.totalorder %v115_v16, 4 }
  0xe8   :  { %v120_v21 = vshrl.u32 %v279_v19, %v117_v15  ;;  %v123_v23 = vshrl.u32 %v280_v22, %v117_v15  ;;  %v126_v26 = vshrl.u32 %v281_v25, %v117_v15  ;;  %v129_v29 = vshrl.u32 %v282_v28, %v117_v15 }
  0xe9   :  { %v132_v32 = vshrl.u32 %v283_v31, %v117_v15  ;;  %v118_v42 = vshrl.u32 %v278_v17, %v117_v15  ;;  %vm136_vm6 = vcmp.lt.s32.totalorder %v115_v16, 3  ;;  %vm135_vm7 = vcmp.lt.s32.totalorder %v115_v16, 2 }
  0xea   :  { %v121_v34 = vor.u32 %v120_v21, %v119_v18  ;;  %v124_v35 = vor.u32 %v123_v23, %v122_v20  ;;  %v127_v36 = vor.u32 %v126_v26, %v125_v24  ;;  %v130_v37 = vor.u32 %v129_v29, %v128_v27 }
  0xeb   :  { %v133_v38 = vor.u32 %v132_v32, %v131_v30 }
  0xec   :  { %v139_v39 = vsel %vm137_vm5, %v127_v36, 2102212464  ;;  %v142_v40 = vsel %vm134_vm4, %v121_v34, %v124_v35  ;;  %v146_v41 = vsel %vm134_vm4, %v124_v35, %v127_v36  ;;  %v143_v43 = vsel %vm137_vm5, %v130_v37, 920167782 }
  0xed   :  { %v147_v44 = vsel %vm137_vm5, %v133_v38, 1326507024  ;;  %v144_v45 = vsel %vm136_vm6, %v127_v36, %v143_v43  ;;  %v138_v48 = vsel %vm134_vm4, %v118_v42, %v121_v34  ;;  %v140_v49 = vsel %vm136_vm6, %v124_v35, %v139_v39 }
  0xee   :  { %v148_v46 = vsel %vm136_vm6, %v130_v37, %v147_v44  ;;  %v145_v50 = vsel %vm135_vm7, %v142_v40, %v144_v45  ;;  %v141_v56 = vsel %vm135_vm7, %v138_v48, %v140_v49 }
  0xef   :  { %v149_v51 = vsel %vm135_vm7, %v146_v41, %v148_v46  ;;  %v323_v54 = vmul.u32.u64.low %v150_v47, %v145_v50  ;;  %v324_v55 = vmul.u32.u64.high %v150_v47, %v145_v50, %v323_v54  ;;  %v157_v58 = vmul.u32 %v150_v47, %v141_v56 }
  0xf0   :  { %v320_v52 = vmul.u32.u64.low %v150_v47, %v149_v51  ;;  %v321_v53 = vmul.u32.u64.high %v150_v47, %v149_v51, %v320_v52 }
  0xf1   :  { %v160_v57 = vadd.s32 1, %v324_v55 }
  0xf2   :  { %vm159_vm8 = vc.u32 %v321_v53, %v323_v54  ;;  %v158_v7 = vadd.s32 %v323_v54, %v321_v53 }
  0xf3   :  { %v161_v59 = vsel %vm159_vm8, %v160_v57, %v324_v55 }
  0xf4   :  { %v162_v60 = vadd.s32 %v161_v59, %v157_v58 }
  0xf6   :  { %v163_v61 = vadd.s32 536870912, %v162_v60 }
  0xf8   :  { %v164_v62 = vshrl.u32 %v163_v61, 30 }
  0xfa   :  { %v165_v63 = vshll.u32 %v164_v62, 30  ;;  %v188_v20 = vsub.s32 4, %v164_v62 }
  0xfc   :  { %v166_v0 = vsub.s32 %v162_v60, %v165_v63  ;;  %v189_v23 = vsel %vm104_vm10, %v188_v20, %v164_v62 }
  0xfd   :  { %v191_v25 = vsel %vm103_vm11, 0, %v189_v23 }
  0xfe   :  { %v168_v1 = vsub.s32 0, %v166_v0  ;;  %v195_v26 = vadd.s32 3, %v191_v25 }
 0x100   :  { %v225_v2 = vmin.u32 %v168_v1, %v166_v0  ;;  %v196_v27 = vand.u32 3, %v195_v26 }
 0x102   :  { %v170_v3 = vclz %v225_v2  ;;  %vm201_vm12 = vcmp.eq.s32.totalorder %v196_v27, 2  ;;  %vm198_vm13 = vcmp.eq.s32.totalorder %v196_v27, 0  ;;  %vm197_vm14 = vcmp.lt.s32.totalorder %v196_v27, 2 }
 0x104   :  { %v226_v4 = vadd.s32 4294967294, %v170_v3 }
 0x106   :  { %vm227_vm9 = vcmp.lt.s32.totalorder %v226_v4, 0 }
 0x107   :  { %v173_v6 = vsel %vm227_vm9, 0, %v226_v4 }
 0x108   :  { %v174_v8 = vsub.s32 32, %v173_v6  ;;  %v178_v9 = vsub.s32 4294967266, %v173_v6  ;;  %v175_v10 = vshll.u32 %v166_v0, %v173_v6 }
 0x10a   :  { %v176_v12 = vshrl.u32 %v158_v7, %v174_v8  ;;  %v179_v13 = vadd.s32 127, %v178_v9 }
 0x10c   :  { %v177_v14 = vor.u32 %v176_v12, %v175_v10  ;;  %v180_v15 = vshll.u32 %v179_v13, 23 }
 0x10e   :  { %v181_v16 = vor.u32 4788187, %v180_v15  ;;  %v184_v18 = vcvt.s32.f32 %v177_v14 }
 0x110   :  { %v182_v17 = vand.u32 2147483647, %v181_v16 }
 0x112   :  { %v185_v19 = vmul.f32 %v184_v18, %v182_v17 }
 0x114   :  { %v186_v21 = vxor.u32 2147483648, %v185_v19 }
 0x116   :  { %v187_v22 = vsel %vm104_vm10, %v186_v21, %v185_v19 }
 0x117   :  { %v190_v24 = vsel %vm103_vm11, %v314_v5, %v187_v22 }
 0x118   :  { %248 = vcosq.f32 %v190_v24 }
 0x119   :  { %250 = vsinq.f32 %v190_v24 }
 0x122   :  { %v249_v28 = vpop.eup %248 }
 0x123   :  { %v251_v29 = vpop.eup %250  ;;  %v202_v30 = vxor.u32 2147483648, %v249_v28 }
 0x124   :  { %v199_v31 = vxor.u32 2147483648, %v251_v29 }
 0x125   :  { %v203_v32 = vsel %vm201_vm12, %v202_v30, %v251_v29 }
 0x126   :  { %v200_v33 = vsel %vm198_vm13, %v249_v28, %v199_v31 }
 0x127   :  { %v204_v11 = vsel %vm197_vm14, %v200_v33, %v203_v32 }
 0x128   :  { %v205_v34 = vsel %vm194_vm15, nan, %v204_v11 }
 0x129   :  { %206 = vst [vmem:[#allocation2] sm:$0xff] %v205_v34 }
 0x12a   :  { %263 = shalt.err (!%p260_p4)
}
 0x12b   :  { %s264_s20 = scalar_lea.hbm %s350_s3, 128 }
 0x12c   :  { %p265_p5 = scmp.ne.s32.totalorder %s350_s3, %s264_s20  ;;  %p268_p6 = scmp.lt.u32.totalorder %s264_s20, %s350_s3 }
 0x12e   :  { %p270_p7 = pnand %p268_p6, %p265_p5 }
 0x130   :  { %273 = shalt.err (!%p270_p7)
}
 0x131   :  { %216 = dma.vmem_to_hbm [thread:$0]  %s214_s1, 128, %s350_s3, [#allocation3]  }
 0x132   :  { %274 = dma.done.wait [#allocation3], 128  }
 0x133   :  { %275 = vsyncadd [#allocation3], 4294967168 }
 0x134   :  { %220 = vsyncpa [#allocation3], 1 }

</bundles_post_ra>
